<compile_context>
chip_gen: v5e
topology: v5e:2x2
jax: 0.10.0
libtpu: 0.0.40
codegen_flags: <defaults>
</compile_context>

<pallas_src>
import functools

import jax
import jax.numpy as jnp
from jax import lax
from jax.experimental import pallas as pl
from jax.experimental.pallas import tpu as pltpu

F32_EPS = float(jnp.finfo(jnp.float32).eps)


def _round_up(v, m):
    return ((v + m - 1) // m) * m


def _vmem_budget_bytes():
    """Per-chip VMEM budget for pipelined tiles (leave ~25% headroom)."""
    cap = None
    try:
        info = pltpu.get_tpu_info()
        cap = getattr(info, "vmem_capacity_bytes", None)
    except Exception:
        cap = None
    if not cap or cap <= 0:
        cap = 64 * 1024 * 1024          # conservative fallback (v7x-sized VMEM)
    return int(cap) * 3 // 4            # 96 MiB on v5e/v6e, 48 MiB on v7x


# ---------------------------------------------------------------------------
# Kernel 1: per-output-row symmetric int8 quant-dequant of (weight * weight_scale).
# Runs ONCE over the weight (grid over N tiles), not per M tile.
# ---------------------------------------------------------------------------
def _weight_qdq_kernel(w_ref, ws_ref, o_ref):
    w = w_ref[...].astype(jnp.float32) * ws_ref[...]            # (tn, K) * (1, K)
    amax = jnp.max(jnp.abs(w), axis=1, keepdims=True)           # per-out-row abs max
    scale = jnp.maximum(amax / 127.5, F32_EPS)                  # sym scale, clipped to eps
    inv_scale = 1.0 / scale                                     # per-row reciprocal (tn divides)
    q = jnp.clip(jnp.round(w * inv_scale), -128.0, 127.0)       # int8 sym quant
    o_ref[...] = (q * scale).astype(o_ref.dtype)                # dequant (bf16 for MXU)


def _quant_dequant_weight(weight_p, w_scale, tn, out_dtype, budget):
    n_pad, k = weight_p.shape
    in_b = weight_p.dtype.itemsize
    out_b = jnp.dtype(out_dtype).itemsize
    tn_w = max(8, tn)
    # shrink row-tile if K is huge (rows are independent, partial blocks are safe)
    while tn_w > 8 and 2 * tn_w * k * (in_b + out_b) + 2 * k * 4 > budget:
        tn_w = max(8, _round_up(tn_w // 2, 8))
    return pl.pallas_call(
        _weight_qdq_kernel,
        out_shape=jax.ShapeDtypeStruct((n_pad, k), out_dtype),
        grid=(pl.cdiv(n_pad, tn_w),),
        in_specs=[pl.BlockSpec((tn_w, k), lambda j: (j, 0)),
                  pl.BlockSpec((1, k), lambda j: (0, 0))],
        out_specs=pl.BlockSpec((tn_w, k), lambda j: (j, 0)),
        compiler_params=pltpu.CompilerParams(dimension_semantics=("parallel",)),
    )(weight_p, w_scale)


# ---------------------------------------------------------------------------
# Kernel 2: tiled matmul + bias.  Activation q-dq is computed once per M tile
# (when the inner N index j == 0) into a persistent VMEM scratch in bf16, so
# the per-(i, j) body is pure MXU work.
# ---------------------------------------------------------------------------
def _linear_kernel(qp_ref, x_ref, qs_ref, w_ref, b_ref, o_ref, *scratch,
                   quantize_input, mxu_dtype):
    """
    qp_ref  : SMEM (2,) f32 -> [scale_x, zero_point(bias_x)]
    x_ref   : VMEM (tm, K)   activation tile (native dtype); block index only depends on i
    qs_ref  : VMEM (1, K)    pre-folded per-channel scale = input_scale / scale_x
    w_ref   : VMEM (tn, K)   weight tile (q-dq'ed bf16, or cast/native), PyTorch (out,in) layout
    b_ref   : VMEM (1, tn)   bias tile (f32)
    o_ref   : VMEM (tm, tn)
    scratch : optional VMEM (tm, K) mxu_dtype — q-dq'ed activation tile, reused across j
    """
    if quantize_input:
        (xq_ref,) = scratch

        @pl.when(pl.program_id(1) == 0)          # once per M tile (j iterated sequentially)
        def _():
            scale_x = qp_ref[0]
            bias_x = qp_ref[1]
            x = x_ref[...].astype(jnp.float32)
            q = jnp.clip(jnp.round(x * qs_ref[...] + bias_x), 0.0, 255.0)   # uint8 asym quant
            xq_ref[...] = (scale_x * (q - bias_x)).astype(xq_ref.dtype)     # dequant -> scratch

        lhs = xq_ref[...]
    else:
        lhs = x_ref[...].astype(mxu_dtype)

    # Contract last dim of both operands (no transpose materialization); f32 accumulation.
    out = lax.dot_general(
        lhs, w_ref[...].astype(mxu_dtype),
        dimension_numbers=(((1,), (1,)), ((), ())),
        preferred_element_type=jnp.float32)
    o_ref[...] = (out + b_ref[...]).astype(o_ref.dtype)


# ---------------------------------------------------------------------------
# Wrapper: JAX/Pallas equivalent of WrapperLayer.forward for an nn.Linear orig_layer.
# ---------------------------------------------------------------------------
def wrapper_layer_forward(x, weight, bias, input_min, input_max,
                          input_scale=None, weight_scale=None,
                          quant=True, do_blockwise=False,
                          tm=None, tn=None, out_dtype=None, mxu_dtype=None):
    N, K = weight.shape
    orig_shape = x.shape
    if out_dtype is None:
        out_dtype = x.dtype
    x2 = x.reshape(-1, K)                       # keep native dtype (no wrapper upcast / no pad)
    M = x2.shape[0]
    x_bytes = x2.dtype.itemsize
    out_bytes = jnp.dtype(out_dtype).itemsize

    quantize_input = bool(quant)
    quantize_weight = bool(quant) and not do_blockwise

    # MXU operand dtype: quantized values lose nothing meaningful in bf16 (4x MXU throughput,
    # half the weight DMA).  quant=False keeps f32 for exact nn.Linear semantics unless overridden.
    if mxu_dtype is None:
        mxu_dtype = jnp.bfloat16 if quant else jnp.float32
    mxu_bytes = jnp.dtype(mxu_dtype).itemsize

    budget = _vmem_budget_bytes()

    # ---- tiling ----
    if tn is None:
        tn = 256
    if N <= tn:
        tn_eff = max(128, _round_up(N, 128))    # lane-dense output even for small N
    else:
        tn_eff = _round_up(int(tn), 128)

    if tm is None:
        tm = 512 if budget >= (80 << 20) else 256   # bigger M tiles on 128-MiB VMEM parts
    tm_eff = min(int(tm), _round_up(max(M, 1), 8))
    tm_eff = _round_up(tm_eff, 8)

    def vmem_est(tm_e, tn_e):
        return (2 * tm_e * K * x_bytes            # x tile (double buffered)
                + tm_e * K * mxu_bytes            # x_dq scratch (persistent)
                + 2 * tn_e * K * mxu_bytes        # weight tile
                + 2 * tm_e * tn_e * out_bytes     # output tile
                + 2 * (K * 4 + tn_e * 4))         # folded scale + bias

    while vmem_est(tm_eff, tn_eff) > budget and (tm_eff > 8 or tn_eff > 128):
        if tm_eff >= tn_eff and tm_eff > 8:
            tm_eff = max(8, _round_up(tm_eff // 2, 8))
        elif tn_eff > 128:
            tn_eff //= 2
        else:
            tm_eff = max(8, _round_up(tm_eff // 2, 8))

    N_pad = _round_up(N, tn_eff)

    # ---- weight / bias prep (small one-time pads only) ----
    w_p = weight if N_pad == N else jnp.pad(weight, ((0, N_pad - N), (0, 0)))
    if bias is None:
        b2 = jnp.zeros((1, N_pad), jnp.float32)
    else:
        b2 = jnp.asarray(bias, jnp.float32).reshape(1, N)
        if N_pad != N:
            b2 = jnp.pad(b2, ((0, 0), (0, N_pad - N)))

    # ---- activation quant params (tiny glue reductions) ----
    if quantize_input:
        if input_scale is not None:
            in_scale = jnp.asarray(input_scale, jnp.float32).reshape(K)
            min_x = jnp.min(jnp.asarray(input_min, jnp.float32) * in_scale)
            max_x = jnp.max(jnp.asarray(input_max, jnp.float32) * in_scale)
        else:
            in_scale = jnp.ones((K,), jnp.float32)
            min_x = jnp.min(jnp.asarray(input_min, jnp.float32))
            max_x = jnp.max(jnp.asarray(input_max, jnp.float32))
        scale_x = jnp.maximum((max_x - min_x) / 255.0, F32_EPS)
        bias_x = jnp.round((0.0 - min_x) / scale_x)
        # Pre-fold input_scale * (1/scale_x) into one per-channel vector (one mul-add in kernel).
        q_scale = (in_scale / scale_x).reshape(1, K)
        qparams = jnp.stack([scale_x, bias_x]).astype(jnp.float32)
    else:
        q_scale = jnp.ones((1, K), jnp.float32)
        qparams = jnp.zeros((2,), jnp.float32)

    # ---- weight q-dq, hoisted into a one-shot kernel ----
    if quantize_weight:
        if weight_scale is not None:
            w_scale = jnp.asarray(weight_scale, jnp.float32).reshape(1, K)
        else:
            w_scale = jnp.ones((1, K), jnp.float32)
        w_eff = _quant_dequant_weight(w_p, w_scale, tn_eff, mxu_dtype, budget)
    else:
        w_eff = w_p.astype(mxu_dtype) if w_p.dtype != jnp.dtype(mxu_dtype) else w_p

    kernel = functools.partial(_linear_kernel,
                               quantize_input=quantize_input,
                               mxu_dtype=mxu_dtype)
    scratch = [pltpu.VMEM((tm_eff, K), mxu_dtype)] if quantize_input else []

    out = pl.pallas_call(
        kernel,
        out_shape=jax.ShapeDtypeStruct((M, N_pad), out_dtype),
        grid=(pl.cdiv(M, tm_eff), N_pad // tn_eff),
        in_specs=[
            pl.BlockSpec(memory_space=pltpu.MemorySpace.SMEM),       # [scale_x, zero_point]
            pl.BlockSpec((tm_eff, K), lambda i, j: (i, 0)),          # x tile (depends on i only)
            pl.BlockSpec((1, K), lambda i, j: (0, 0)),               # folded per-channel scale
            pl.BlockSpec((tn_eff, K), lambda i, j: (j, 0)),          # weight tile
            pl.BlockSpec((1, tn_eff), lambda i, j: (0, j)),          # bias tile
        ],
        out_specs=pl.BlockSpec((tm_eff, tn_eff), lambda i, j: (i, j)),
        scratch_shapes=scratch,
        compiler_params=pltpu.CompilerParams(
            # N axis MUST be 'arbitrary': the x_dq scratch written at j == 0 is reused across j,
            # which requires sequential j on one core.  M is the core-sharded axis (v7x megacore).
            dimension_semantics=("parallel", "arbitrary"),
            vmem_limit_bytes=int(budget)),
    )(qparams, x2, q_scale, w_eff, b2)

    if N_pad != N:
        out = out[:, :N]
    return out.reshape(orig_shape[:-1] + (N,))


# ---------------------------------------------------------------------------
# Pure-JAX reference replicating the PyTorch q_dq_forward math (Linear, sym weight).
# ---------------------------------------------------------------------------
def _reference_forward(x, weight, bias, input_min, input_max, input_scale, weight_scale):
    w = weight * weight_scale.reshape(1, -1)
    amax = jnp.max(jnp.abs(w), axis=1, keepdims=True)
    scale_w = jnp.maximum(amax / 127.5, F32_EPS)
    w_dq = jnp.clip(jnp.round(w / scale_w), -128.0, 127.0) * scale_w

    xs = x * input_scale
    min_x = jnp.min(input_min * input_scale)
    max_x = jnp.max(input_max * input_scale)
    scale_x = jnp.maximum((max_x - min_x) / 255.0, F32_EPS)
    bias_x = jnp.round(-min_x / scale_x)
    x_dq = scale_x * (jnp.clip(jnp.round(xs / scale_x + bias_x), 0.0, 255.0) - bias_x)

    out = jnp.einsum("bsk,nk->bsn", x_dq, w_dq, precision=jax.lax.Precision.HIGHEST)
    return out + bias.reshape(1, 1, -1)


if __name__ == "__main__":
    key = jax.random.PRNGKey(0)
    k_x, k_w, k_b, k_min, k_max, k_is, k_ws = jax.random.split(key, 7)

    batch, seq, hidden_in, hidden_out = 2, 8, 32, 32

    x = jax.random.normal(k_x, (batch, seq, hidden_in), jnp.float32)
    weight = 0.1 * jax.random.normal(k_w, (hidden_out, hidden_in), jnp.float32)
    bias = 0.05 * jax.random.normal(k_b, (hidden_out,), jnp.float32)

    # per-input-channel calibration stats and smooth-quant scales
    input_max = 1.0 + jnp.abs(jax.random.normal(k_max, (hidden_in,), jnp.float32))
    input_min = -(1.0 + jnp.abs(jax.random.normal(k_min, (hidden_in,), jnp.float32)))
    input_scale = 0.5 + jax.random.uniform(k_is, (hidden_in,), jnp.float32)
    weight_scale = 1.0 / input_scale  # typical smooth-quant pairing

    # ---- quantized path (weight + activation q-dq) vs f32 reference ----
    out = wrapper_layer_forward(x, weight, bias, input_min, input_max,
                                input_scale=input_scale, weight_scale=weight_scale,
                                quant=True, do_blockwise=False)
    out = jax.block_until_ready(out)
    ref = _reference_forward(x, weight, bias, input_min, input_max, input_scale, weight_scale)
    assert out.shape == (batch, seq, hidden_out), out.shape
    err = float(jnp.max(jnp.abs(out - ref)))
    assert jnp.allclose(out, ref, rtol=1e-2, atol=1e-2), err

    # ---- blockwise path (activation q-dq only) ----
    out_bw = jax.block_until_ready(
        wrapper_layer_forward(x, weight, bias, input_min, input_max,
                              input_scale=input_scale, weight_scale=weight_scale,
                              quant=True, do_blockwise=True))
    assert out_bw.shape == (batch, seq, hidden_out)

    # ---- quant=False path (plain linear, f32 operands) ----
    out_fp = jax.block_until_ready(
        wrapper_layer_forward(x, weight, bias, input_min, input_max, quant=False))
    ref_fp = jnp.einsum("bsk,nk->bsn", x, weight,
                        precision=jax.lax.Precision.HIGHEST) + bias.reshape(1, 1, -1)
    assert out_fp.shape == (batch, seq, hidden_out)
    assert jnp.allclose(out_fp, ref_fp, rtol=1e-2, atol=1e-2)

    print("KERNEL_OK")
</pallas_src>

<mosaic_0001>
module attributes {stable_mosaic.version = 11 : i64} {
  func.func @_weight_qdq_kernel(%arg0: i32, %arg1: memref<128x32xf32, #tpu.memory_space<vmem>>, %arg2: memref<1x32xf32, #tpu.memory_space<vmem>>, %arg3: memref<128x32xbf16, #tpu.memory_space<vmem>>) attributes {dimension_semantics = [#tpu.dimension_semantics<parallel>], iteration_bounds = array<i64: 1>, scalar_prefetch = 0 : i64, scratch_operands = 0 : i64, tpu.core_type = #tpu.core_type<tc>, window_params = [{transform_indices = @transform_0, window_bounds = array<i64: 128, 32>}, {pipeline_mode = #tpu.pipeline_mode<synchronous>, transform_indices = @transform_1, window_bounds = array<i64: 1, 32>}, {transform_indices = @transform_2, window_bounds = array<i64: 128, 32>}]} {
    %c0 = arith.constant 0 : index
    %c0_0 = arith.constant 0 : index
    %0 = vector.load %arg1[%c0, %c0_0] : memref<128x32xf32, #tpu.memory_space<vmem>>, vector<128x32xf32>
    %c0_1 = arith.constant 0 : index
    %c0_2 = arith.constant 0 : index
    %1 = vector.load %arg2[%c0_1, %c0_2] : memref<1x32xf32, #tpu.memory_space<vmem>>, vector<1x32xf32>
    %2 = vector.broadcast %1 : vector<1x32xf32> to vector<128x32xf32>
    %3 = arith.mulf %0, %2 : vector<128x32xf32>
    %4 = math.absf %3 : vector<128x32xf32>
    %cst = arith.constant dense<0xFF800000> : vector<128xf32>
    %5 = vector.multi_reduction <maximumf>, %4, %cst [1] : vector<128x32xf32> to vector<128xf32>
    %6 = vector.shape_cast %5 : vector<128xf32> to vector<128x1xf32>
    %cst_3 = arith.constant 1.275000e+02 : f32
    %7 = vector.broadcast %cst_3 : f32 to vector<128x1xf32>
    %8 = arith.divf %6, %7 : vector<128x1xf32>
    %cst_4 = arith.constant 1.1920929E-7 : f32
    %9 = vector.broadcast %cst_4 : f32 to vector<128x1xf32>
    %10 = arith.maximumf %8, %9 : vector<128x1xf32>
    %cst_5 = arith.constant 1.000000e+00 : f32
    %11 = vector.broadcast %cst_5 : f32 to vector<128x1xf32>
    %12 = arith.divf %11, %10 : vector<128x1xf32>
    %13 = vector.broadcast %12 : vector<128x1xf32> to vector<128x32xf32>
    %14 = arith.mulf %3, %13 : vector<128x32xf32>
    %15 = math.roundeven %14 : vector<128x32xf32>
    %cst_6 = arith.constant -1.280000e+02 : f32
    %cst_7 = arith.constant 1.270000e+02 : f32
    %16 = vector.broadcast %cst_6 : f32 to vector<128x32xf32>
    %17 = arith.maximumf %16, %15 : vector<128x32xf32>
    %18 = vector.broadcast %cst_7 : f32 to vector<128x32xf32>
    %19 = arith.minimumf %18, %17 : vector<128x32xf32>
    %20 = vector.broadcast %10 : vector<128x1xf32> to vector<128x32xf32>
    %21 = arith.mulf %19, %20 : vector<128x32xf32>
    %22 = arith.truncf %21 : vector<128x32xf32> to vector<128x32xbf16>
    %c0_8 = arith.constant 0 : index
    %c0_9 = arith.constant 0 : index
    %23 = vector.load %arg3[%c0_8, %c0_9] : memref<128x32xbf16, #tpu.memory_space<vmem>>, vector<128x32xbf16>
    tpu.vector_store %arg3[%c0_8, %c0_9], %22 {strides = array<i32>} : memref<128x32xbf16, #tpu.memory_space<vmem>>, vector<128x32xbf16>,
    return
  }
  func.func @transform_0(%arg0: i32) -> (i32, i32) {
    %c0_i32 = arith.constant 0 : i32
    %c0_i32_0 = arith.constant 0 : i32
    return %arg0, %c0_i32 : i32, i32
  }
  func.func @transform_1(%arg0: i32) -> (i32, i32) {
    %c0_i32 = arith.constant 0 : i32
    %c0_i32_0 = arith.constant 0 : i32
    %c0_i32_1 = arith.constant 0 : i32
    return %c0_i32, %c0_i32_0 : i32, i32
  }
  func.func @transform_2(%arg0: i32) -> (i32, i32) {
    %c0_i32 = arith.constant 0 : i32
    %c0_i32_0 = arith.constant 0 : i32
    return %arg0, %c0_i32 : i32, i32
  }
}

</mosaic_0001>

<bundles_post_ra>
// kernel: tpu_custom_call.1
= control target key start
LH: loop header
LB: loop body
LE: loop exit
PB: predicated region body
PF: predicated region fallthrough
CT: control target
= control target key end

     0   :  { %vm63_vm0 = vcmask 261120   ;;  %s1198_s0 = inlined_call_operand.vmem [shape: f32[128,32], index: 0, kind: input, shape index: {}]   ;;  %s1199_s1 = inlined_call_operand.vmem [shape: f32[1,32], index: 1, kind: input, shape index: {}]   ;;  %s1200_s2 = inlined_call_operand.vmem [shape: bf16[128,32], index: 2, kind: output, shape index: {}]  }
   0x1   :  { %v15_v0 = vld [vmem:[%s1198_s0 + $0x20] sm:$0xff]  ;;  %v13_v2 = vld [vmem:[%s1198_s0 + $0x10] sm:$0xff]  ;;  %v16_v4 = vld [vmem:[%s1198_s0 + $0x28] sm:$0xff] }
   0x2   :  { %v694_v1 = vld [vmem:[%s1199_s1] ss:$0 sm:$0xff]  ;;  %v14_v8 = vld [vmem:[%s1198_s0 + $0x18] sm:$0xff]  ;;  %v12_v9 = vld [vmem:[%s1198_s0 + $0x8] sm:$0xff] }
   0x3   :  { %v11_v3 = vld [vmem:[%s1198_s0] sm:$0xff]  ;;  %v706_v5 = vmul.f32 %v694_v1, %v15_v0  ;;  %v709_v6 = vmul.f32 %v694_v1, %v13_v2  ;;  %v721_v10 = vmul.f32 %v694_v1, %v16_v4  ;;  %v727_v14 = vmul.f32 %v694_v1, %v14_v8  ;;  %v18_v23 = vld [vmem:[%s1198_s0 + $0x38] sm:$0xff]  ;;  %v17_v24 = vld [vmem:[%s1198_s0 + $0x30] sm:$0xff] }
   0x4   :  { %v712_v7 = vmul.f32 %v694_v1, %v11_v3  ;;  %v730_v15 = vmul.f32 %v694_v1, %v12_v9  ;;  %v19_v22 = vld [vmem:[%s1198_s0 + $0x40] sm:$0xff]  ;;  %v753_v28 = vmul.f32 %v694_v1, %v18_v23  ;;  %v757_v30 = vmul.f32 %v694_v1, %v17_v24  ;;  %v22_v34 = vld [vmem:[%s1198_s0 + $0x58] sm:$0xff]  ;;  %v21_v35 = vld [vmem:[%s1198_s0 + $0x50] sm:$0xff] }
   0x5   :  { %v51_v11 = vand.u32 2147483647, %v706_v5  ;;  %v49_v12 = vand.u32 2147483647, %v709_v6  ;;  %v52_v19 = vand.u32 2147483647, %v721_v10  ;;  %v750_v27 = vmul.f32 %v694_v1, %v19_v22 }
   0x6   :  { %v47_v13 = vand.u32 2147483647, %v712_v7  ;;  %v50_v20 = vand.u32 2147483647, %v727_v14  ;;  %v48_v21 = vand.u32 2147483647, %v730_v15  ;;  %v774_v39 = vmul.f32 %v694_v1, %v22_v34 }
   0x7   :  { %v76_v16 = vsel %vm63_vm0, %v51_v11, -inf  ;;  %v70_v17 = vsel %vm63_vm0, %v49_v12, -inf  ;;  %v79_v25 = vsel %vm63_vm0, %v52_v19, -inf  ;;  %v55_v31 = vand.u32 2147483647, %v750_v27  ;;  %v20_v36 = vld [vmem:[%s1198_s0 + $0x48] sm:$0xff] }
   0x8   :  { %v64_v18 = vsel %vm63_vm0, %v47_v13, -inf  ;;  %77 = vmax.xlane.f32.xlu2 %v76_v16  ;;  %71 = vmax.xlane.f32.xlu1 %v70_v17  ;;  %v73_v26 = vsel %vm63_vm0, %v50_v20, -inf  ;;  %v67_v29 = vsel %vm63_vm0, %v48_v21, -inf  ;;  %v54_v32 = vand.u32 2147483647, %v753_v28  ;;  %v25_v46 = vld [vmem:[%s1198_s0 + $0x70] sm:$0xff] }
   0x9   :  { %65 = vmax.xlane.f32.xlu0 %v64_v18  ;;  %v53_v33 = vand.u32 2147483647, %v757_v30  ;;  %v88_v37 = vsel %vm63_vm0, %v55_v31, -inf  ;;  %v777_v40 = vmul.f32 %v694_v1, %v21_v35  ;;  %v781_v42 = vmul.f32 %v694_v1, %v20_v36  ;;  %v24_v47 = vld [vmem:[%s1198_s0 + $0x68] sm:$0xff]  ;;  %v23_v48 = vld [vmem:[%s1198_s0 + $0x60] sm:$0xff]  ;;  %v26_v58 = vld [vmem:[%s1198_s0 + $0x78] sm:$0xff] }
   0xa   :  { %v85_v38 = vsel %vm63_vm0, %v54_v32, -inf  ;;  %v58_v43 = vand.u32 2147483647, %v774_v39  ;;  %v798_v51 = vmul.f32 %v694_v1, %v25_v46  ;;  %v801_v52 = vmul.f32 %v694_v1, %v24_v47 }
   0xb   :  { %v82_v41 = vsel %vm63_vm0, %v53_v33, -inf  ;;  %v57_v44 = vand.u32 2147483647, %v777_v40  ;;  %v56_v45 = vand.u32 2147483647, %v781_v42  ;;  %v805_v54 = vmul.f32 %v694_v1, %v23_v48 }
   0xc   :  { %v97_v49 = vsel %vm63_vm0, %v58_v43, -inf  ;;  %v61_v55 = vand.u32 2147483647, %v798_v51  ;;  %v60_v56 = vand.u32 2147483647, %v801_v52  ;;  %v817_v62 = vmul.f32 %v694_v1, %v26_v58 }
   0xd   :  { %v94_v50 = vsel %vm63_vm0, %v57_v44, -inf  ;;  %v91_v53 = vsel %vm63_vm0, %v56_v45, -inf  ;;  %v59_v57 = vand.u32 2147483647, %v805_v54  ;;  %v672_v2 = vmov 127.5  }
   0xe   :  { %v106_v59 = vsel %vm63_vm0, %v61_v55, -inf  ;;  %v103_v60 = vsel %vm63_vm0, %v60_v56, -inf  ;;  %v62_v63 = vand.u32 2147483647, %v817_v62  ;;  %638 = vrcp.f32 %v672_v2 }
   0xf   :  { %v100_v61 = vsel %vm63_vm0, %v59_v57, -inf }
  0x10   :  { %80 = vmax.xlane.f32.xlu2 %v79_v25  ;;  %74 = vmax.xlane.f32.xlu1 %v73_v26  ;;  %v109_v0 = vsel %vm63_vm0, %v62_v63, -inf }
  0x11   :  { %68 = vmax.xlane.f32.xlu0 %v67_v29 }
  0x14   :  { %v639_v3 = vpop.eup %638 }
  0x15   :  { %v113_v4 = vmul.f32 127.5, %v639_v3  ;;  %vm117_vm1 = vweird.f32 %v639_v3 }
  0x17   :  { %v114_v8 = vsub.f32 1.0, %v113_v4 }
  0x18   :  { %89 = vmax.xlane.f32.xlu2 %v88_v37  ;;  %86 = vmax.xlane.f32.xlu1 %v85_v38 }
  0x19   :  { %83 = vmax.xlane.f32.xlu0 %v82_v41  ;;  %v115_v9 = vmul.f32 %v639_v3, %v114_v8 }
  0x1b   :  { %v116_v11 = vadd.f32 %v639_v3, %v115_v9 }
  0x1d   :  { %v821_v12 = vsel %vm117_vm1, %v639_v3, %v116_v11 }
  0x20   :  { %98 = vmax.xlane.f32.xlu2 %v97_v49  ;;  %95 = vmax.xlane.f32.xlu1 %v94_v50 }
  0x21   :  { %92 = vmax.xlane.f32.xlu0 %v91_v53 }
  0x28   :  { %107 = vmax.xlane.f32.xlu2 %v106_v59  ;;  %104 = vmax.xlane.f32.xlu1 %v103_v60 }
  0x29   :  { %101 = vmax.xlane.f32.xlu0 %v100_v61 }
  0x31   :  { %110 = vmax.xlane.f32.xlu0 %v109_v0 }
  0x7b   :  { %v78_v1 = vpop.xlane.xlu2 %77  ;;  %v72_v13 = vpop.xlane.xlu1 %71 }
  0x7c   :  { %v123_v16 = vmul.f32 %v821_v12, %v78_v1  ;;  %v121_v17 = vmul.f32 %v821_v12, %v72_v13  ;;  %v66_v18 = vpop.xlane.xlu0 %65 }
  0x7d   :  { %v119_v19 = vmul.f32 %v821_v12, %v66_v18 }
  0x7e   :  { %v826_v20 = vmax.f32 %v123_v16, 1.1920929e-07  ;;  %v828_v21 = vmax.f32 %v121_v17, 1.1920929e-07 }
  0x7f   :  { %v830_v22 = vmax.f32 %v119_v19, 1.1920929e-07 }
  0x80   :  { %640 = vrcp.f32 %v826_v20  ;;  %v220_v23 = vand.u32 2147483647, %v826_v20  ;;  %v222_v24 = vand.u32 2147483648, %v826_v20  ;;  %v190_v29 = vand.u32 2147483647, %v828_v21 }
  0x81   :  { %642 = vrcp.f32 %v828_v21  ;;  %vm216_vm2 = vweird.f32 %v826_v20  ;;  %v192_v34 = vand.u32 2147483648, %v828_v21  ;;  %vm186_vm3 = vweird.f32 %v828_v21 }
  0x82   :  { %644 = vrcp.f32 %v830_v22  ;;  %v160_v36 = vand.u32 2147483647, %v830_v22  ;;  %vm849_vm4 = vcmp.eq.f32.partialorder %v220_v23, 8.507059e+37  ;;  %v223_v45 = vor.u32 1.1754944e-38, %v222_v24 }
  0x83   :  { %v81_v25 = vpop.xlane.xlu2 %80  ;;  %v75_v26 = vpop.xlane.xlu1 %74  ;;  %vm855_vm5 = vcmp.eq.f32.partialorder %v190_v29, 8.507059e+37  ;;  %vm156_vm6 = vweird.f32 %v830_v22  ;;  %v193_v53 = vor.u32 1.1754944e-38, %v192_v34  ;;  %v162_v56 = vand.u32 2147483648, %v830_v22 }
  0x84   :  { %v124_v31 = vmul.f32 %v821_v12, %v81_v25  ;;  %v122_v32 = vmul.f32 %v821_v12, %v75_v26  ;;  %v69_v33 = vpop.xlane.xlu0 %68  ;;  %vm863_vm7 = vcmp.eq.f32.partialorder %v160_v36, 8.507059e+37 }
  0x85   :  { %v120_v46 = vmul.f32 %v821_v12, %v69_v33  ;;  %v163_v9 = vor.u32 1.1754944e-38, %v162_v56 }
  0x86   :  { %v641_v35 = vpop.eup %640  ;;  %v844_v37 = vmax.f32 %v124_v31, 1.1920929e-07  ;;  %v846_v38 = vmax.f32 %v122_v32, 1.1920929e-07 }
  0x87   :  { %v643_v41 = vpop.eup %642  ;;  %v212_v43 = vmul.f32 %v641_v35, %v826_v20  ;;  %vm217_vm8 = vweird.f32 %v641_v35  ;;  %v869_v63 = vmax.f32 %v120_v46, 1.1920929e-07 }
  0x88   :  { %v645_v47 = vpop.eup %644  ;;  %v182_v48 = vmul.f32 %v643_v41, %v828_v21  ;;  %646 = vrcp.f32 %v844_v37  ;;  %v237_v59 = vand.u32 2147483648, %v844_v37  ;;  %vm187_vm9 = vweird.f32 %v643_v41  ;;  %vm218_vm11 = vmor %vm216_vm2, %vm217_vm8 }
  0x89   :  { %v213_v50 = vsub.f32 1.0, %v212_v43  ;;  %v152_v55 = vmul.f32 %v645_v47, %v830_v22  ;;  %648 = vrcp.f32 %v846_v38  ;;  %v235_v2 = vand.u32 2147483647, %v844_v37  ;;  %vm188_vm13 = vmor %vm186_vm3, %vm187_vm9 }
  0x8a   :  { %v183_v57 = vsub.f32 1.0, %v182_v48  ;;  %v207_v3 = vand.u32 2147483648, %v846_v38  ;;  %vm157_vm10 = vweird.f32 %v645_v47  ;;  %vm231_vm12 = vweird.f32 %v844_v37 }
  0x8b   :  { %v214_v60 = vmul.f32 %v641_v35, %v213_v50  ;;  %v153_v61 = vsub.f32 1.0, %v152_v55  ;;  %v238_v13 = vor.u32 1.1754944e-38, %v237_v59  ;;  %v205_v16 = vand.u32 2147483647, %v846_v38  ;;  %vm158_vm14 = vmor %vm156_vm6, %vm157_vm10 }
  0x8c   :  { %v184_v0 = vmul.f32 %v643_v41, %v183_v57  ;;  %650 = vrcp.f32 %v869_v63  ;;  %vm888_vm15 = vcmp.eq.f32.partialorder %v235_v2, 8.507059e+37  ;;  %v892_v29 = vor.u32 1.1754944e-38, %v207_v3 }
  0x8d   :  { %v215_v4 = vadd.f32 %v641_v35, %v214_v60  ;;  %v154_v8 = vmul.f32 %v645_v47, %v153_v61  ;;  %v175_v31 = vand.u32 2147483647, %v869_v63  ;;  %vm201_vm0 = vweird.f32 %v846_v38 }
  0x8e   :  { %v647_v11 = vpop.eup %646  ;;  %v185_v1 = vadd.f32 %v643_v41, %v184_v0  ;;  %v177_v43 = vand.u32 2147483648, %v869_v63  ;;  %vm171_vm8 = vweird.f32 %v869_v63 }
  0x8f   :  { %v219_v17 = vsel %vm218_vm11, %v641_v35, %v215_v4  ;;  %v155_v18 = vadd.f32 %v645_v47, %v154_v8  ;;  %v227_v19 = vmul.f32 %v647_v11, %v844_v37  ;;  %v881_v23 = vpop.eup %648  ;;  %vm232_vm1 = vweird.f32 %v647_v11 }
  0x90   :  { %v224_v24 = vsel %vm849_vm4, %v223_v45, %v219_v17  ;;  %v189_v25 = vsel %vm188_vm13, %v643_v41, %v185_v1  ;;  %vm202_vm2 = vweird.f32 %v881_v23  ;;  %vm913_vm4 = vcmp.eq.f32.partialorder %v205_v16, 8.507059e+37  ;;  %vm233_vm6 = vmor %vm231_vm12, %vm232_vm1  ;;  %v90_v16 = vpop.xlane.xlu2 %89 }
  0x91   :  { %v395_v32 = vmul.f32 %v224_v24, %v706_v5  ;;  %v194_v33 = vsel %vm855_vm5, %v193_v53, %v189_v25  ;;  %v159_v34 = vsel %vm158_vm14, %v645_v47, %v155_v18  ;;  %v228_v35 = vsub.f32 1.0, %v227_v19  ;;  %vm203_vm11 = vmor %vm201_vm0, %vm202_vm2 }
  0x92   :  { %v393_v36 = vmul.f32 %v194_v33, %v709_v6  ;;  %v164_v41 = vsel %vm863_vm7, %v163_v9, %v159_v34  ;;  %v197_v5 = vmul.f32 %v881_v23, %v846_v38  ;;  %v907_v50 = vpop.eup %650  ;;  %vm487_vm7 = vcmask 257024  }
  0x93   :  { %v540_v44 = vand.u32 2147483647, %v395_v32  ;;  %v542_v45 = vcvt.f32.s32 %v395_v32  ;;  %v391_v46 = vmul.f32 %v164_v41, %v712_v7  ;;  %v229_v49 = vmul.f32 %v647_v11, %v228_v35 }
  0x94   :  { %v524_v48 = vand.u32 2147483647, %v393_v36  ;;  %v526_v47 = vcvt.f32.s32 %v393_v36  ;;  %v545_v53 = vand.u32 2147483648, %v395_v32  ;;  %v529_v55 = vand.u32 2147483648, %v393_v36 }
  0x95   :  { %v543_v6 = vcvt.s32.f32 %v542_v45  ;;  %v510_v56 = vcvt.f32.s32 %v391_v46  ;;  %vm909_vm3 = vcmp.lt.f32.partialorder %v540_v44, 8388608.0  ;;  %v508_v7 = vand.u32 2147483647, %v391_v46 }
  0x96   :  { %v527_v58 = vcvt.s32.f32 %v526_v47  ;;  %v230_v59 = vadd.f32 %v647_v11, %v229_v49  ;;  %vm917_vm5 = vcmp.lt.f32.partialorder %v524_v48, 8388608.0  ;;  %v198_v3 = vsub.f32 1.0, %v197_v5 }
  0x97   :  { %v544_v61 = vand.u32 2147483647, %v543_v6  ;;  %v511_v2 = vcvt.s32.f32 %v510_v56  ;;  %v513_v8 = vand.u32 2147483648, %v391_v46  ;;  %v167_v1 = vmul.f32 %v907_v50, %v869_v63 }
  0x98   :  { %v528_v4 = vand.u32 2147483647, %v527_v58  ;;  %v234_v9 = vsel %vm233_vm6, %v647_v11, %v230_v59  ;;  %v199_v24 = vmul.f32 %v881_v23, %v198_v3  ;;  %vm930_vm9 = vcmp.lt.f32.partialorder %v508_v7, 8388608.0  ;;  %v87_v7 = vpop.xlane.xlu1 %86 }
  0x99   :  { %v546_v17 = vor.u32 %v545_v53, %v544_v61  ;;  %v512_v18 = vand.u32 2147483647, %v511_v2  ;;  %v239_v19 = vsel %vm888_vm15, %v238_v13, %v234_v9  ;;  %v168_v34 = vsub.f32 1.0, %v167_v1 }
  0x9a   :  { %v530_v25 = vor.u32 %v529_v55, %v528_v4  ;;  %v396_v11 = vmul.f32 %v239_v19, %v721_v10  ;;  %v200_v44 = vadd.f32 %v881_v23, %v199_v24  ;;  %vm938_vm10 = vcmp.eq.f32.partialorder %v175_v31, 8.507059e+37  ;;  %v99_v24 = vpop.xlane.xlu2 %98 }
  0x9b   :  { %v547_v35 = vsel %vm909_vm3, %v546_v17, %v395_v32  ;;  %v514_v41 = vor.u32 %v513_v8, %v512_v18  ;;  %v127_v26 = vmul.f32 %v821_v12, %v90_v16  ;;  %vm172_vm12 = vweird.f32 %v907_v50  ;;  %v84_v18 = vpop.xlane.xlu0 %83 }
  0x9c   :  { %v427_v45 = vmax.f32 %v547_v35, -128.0  ;;  %v531_v5 = vsel %vm917_vm5, %v530_v25, %v393_v36  ;;  %v550_v48 = vcvt.f32.s32 %v396_v11  ;;  %v548_v32 = vand.u32 2147483647, %v396_v11  ;;  %vm173_vm13 = vmor %vm171_vm8, %vm172_vm12 }
  0x9d   :  { %v425_v10 = vmax.f32 %v531_v5, -128.0  ;;  %v515_v31 = vsel %vm930_vm9, %v514_v41, %v391_v46  ;;  %v204_v47 = vsel %vm203_vm11, %v881_v23, %v200_v44  ;;  %v553_v55 = vand.u32 2147483648, %v396_v11 }
  0x9e   :  { %v443_v49 = vmin.f32 %v427_v45, 127.0  ;;  %v423_v6 = vmax.f32 %v515_v31, -128.0  ;;  %v551_v53 = vcvt.s32.f32 %v550_v48  ;;  %v209_v56 = vsel %vm913_vm4, %v892_v29, %v204_v47 }
  0x9f   :  { %v441_v36 = vmin.f32 %v425_v10, 127.0  ;;  %v169_v57 = vmul.f32 %v907_v50, %v168_v34  ;;  %v957_v58 = vmax.f32 %v127_v26, 1.1920929e-07  ;;  %v394_v23 = vmul.f32 %v209_v56, %v727_v14 }
  0xa0   :  { %v459_v59 = vmul.f32 %v443_v49, %v826_v20  ;;  %v439_v46 = vmin.f32 %v423_v6, 127.0  ;;  %v552_v61 = vand.u32 2147483647, %v551_v53  ;;  %v178_v3 = vor.u32 1.1754944e-38, %v177_v43 }
  0xa1   :  { %v457_v0 = vmul.f32 %v441_v36, %v828_v21  ;;  %v170_v2 = vadd.f32 %v907_v50, %v169_v57  ;;  %652 = vrcp.f32 %v957_v58  ;;  %v126_v14 = vmul.f32 %v821_v12, %v87_v7 }
  0xa2   :  { %v475_v29 = vpack.c.bf16 %v459_v59, %v459_v59  ;;  %v455_v60 = vmul.f32 %v439_v46, %v830_v22  ;;  %v554_v4 = vor.u32 %v553_v55, %v552_v61  ;;  %vm549_vm14 = vcmp.lt.f32.partialorder %v548_v32, 8388608.0  ;;  %v108_v57 = vpop.xlane.xlu2 %107 }
  0xa3   :  { %v473_v20 = vpack.c.bf16 %v457_v0, %v457_v0  ;;  %v534_v21 = vcvt.f32.s32 %v394_v23  ;;  %v174_v8 = vsel %vm173_vm13, %v907_v50, %v170_v2  ;;  %v532_v9 = vand.u32 2147483647, %v394_v23 }
  0xa4   :  { %492 = vst.msk [vmem:[%s1200_s2 + $0x10] sm:$0xf] %vm487_vm7, %v475_v29  ;;  %v471_v43 = vpack.c.bf16 %v455_v60, %v455_v60  ;;  %v555_v22 = vsel %vm549_vm14, %v554_v4, %v396_v11  ;;  %v179_v1 = vsel %vm938_vm10, %v178_v3, %v174_v8  ;;  %vm276_vm15 = vweird.f32 %v957_v58 }
  0xa5   :  { %490 = vst.msk [vmem:[%s1200_s2 + $0x8] sm:$0xf] %vm487_vm7, %v473_v20  ;;  %v428_v16 = vmax.f32 %v555_v22, -128.0  ;;  %v535_v17 = vcvt.s32.f32 %v534_v21  ;;  %v392_v50 = vmul.f32 %v179_v1, %v730_v15  ;;  %v989_v19 = vmax.f32 %v126_v14, 1.1920929e-07  ;;  %v96_v14 = vpop.xlane.xlu1 %95 }
  0xa6   :  { %488 = vst.msk [vmem:[%s1200_s2] sm:$0xf] %vm487_vm7, %v471_v43  ;;  %v537_v34 = vand.u32 2147483648, %v394_v23  ;;  %vm991_vm0 = vcmp.lt.f32.partialorder %v532_v9, 8388608.0  ;;  %v280_v44 = vand.u32 2147483647, %v957_v58  ;;  %v125_v13 = vmul.f32 %v821_v12, %v84_v18 }
  0xa7   :  { %v653_v25 = vpop.eup %652  ;;  %v444_v33 = vmin.f32 %v428_v16, 127.0  ;;  %v536_v11 = vand.u32 2147483647, %v535_v17  ;;  %v518_v35 = vcvt.f32.s32 %v392_v50  ;;  %v130_v48 = vmul.f32 %v821_v12, %v99_v24 }
  0xa8   :  { %v272_v15 = vmul.f32 %v653_v25, %v957_v58  ;;  %v516_v10 = vand.u32 2147483647, %v392_v50  ;;  %v282_v32 = vand.u32 2147483648, %v957_v58  ;;  %654 = vrcp.f32 %v989_v19 }
  0xa9   :  { %v460_v26 = vmul.f32 %v444_v33, %v844_v37  ;;  %v538_v45 = vor.u32 %v537_v34, %v536_v11  ;;  %v519_v5 = vcvt.s32.f32 %v518_v35  ;;  %v521_v53 = vand.u32 2147483648, %v392_v50  ;;  %v93_v34 = vpop.xlane.xlu0 %92 }
  0xaa   :  { %v273_v31 = vsub.f32 1.0, %v272_v15  ;;  %vm277_vm1 = vweird.f32 %v653_v25  ;;  %v1004_v37 = vmax.f32 %v125_v13, 1.1920929e-07  ;;  %vm1010_vm2 = vcmp.eq.f32.partialorder %v280_v44, 8.507059e+37 }
  0xab   :  { %v476_v47 = vpack.c.bf16 %v460_v26, %v460_v26  ;;  %v539_v49 = vsel %vm991_vm0, %v538_v45, %v394_v23  ;;  %v520_v6 = vand.u32 2147483647, %v519_v5  ;;  %v1014_v7 = vmax.f32 %v130_v48, 1.1920929e-07  ;;  %vm278_vm4 = vmor %vm276_vm15, %vm277_vm1 }
  0xac   :  { %v426_v55 = vmax.f32 %v539_v49, -128.0  ;;  %v274_v36 = vmul.f32 %v653_v25, %v273_v31  ;;  %vm517_vm3 = vcmp.lt.f32.partialorder %v516_v10, 8388608.0  ;;  %656 = vrcp.f32 %v1004_v37 }
  0xad   :  { %493 = vst.msk [vmem:[%s1200_s2 + $0x14] sm:$0xf] %vm487_vm7, %v476_v47  ;;  %v522_v56 = vor.u32 %v521_v53, %v520_v6  ;;  %v283_v23 = vor.u32 1.1754944e-38, %v282_v32  ;;  %v265_v0 = vand.u32 2147483647, %v989_v19  ;;  %v267_v2 = vand.u32 2147483648, %v989_v19 }
  0xae   :  { %v442_v59 = vmin.f32 %v426_v55, 127.0  ;;  %v275_v46 = vadd.f32 %v653_v25, %v274_v36  ;;  %v655_v3 = vpop.eup %654  ;;  %658 = vrcp.f32 %v1014_v7  ;;  %vm261_vm5 = vweird.f32 %v989_v19 }
  0xaf   :  { %v523_v61 = vsel %vm517_vm3, %v522_v56, %v392_v50  ;;  %v257_v21 = vmul.f32 %v655_v3, %v989_v19  ;;  %v252_v8 = vand.u32 2147483648, %v1004_v37  ;;  %vm1030_vm6 = vcmp.eq.f32.partialorder %v265_v0, 8.507059e+37 }
  0xb0   :  { %v458_v29 = vmul.f32 %v442_v59, %v846_v38  ;;  %v424_v60 = vmax.f32 %v523_v61, -128.0  ;;  %v279_v4 = vsel %vm278_vm4, %v653_v25, %v275_v46  ;;  %v250_v38 = vand.u32 2147483647, %v1004_v37 }
  0xb1   :  { %v284_v20 = vsel %vm1010_vm2, %v283_v23, %v279_v4  ;;  %v258_v1 = vsub.f32 1.0, %v257_v21  ;;  %v268_v17 = vor.u32 1.1754944e-38, %v267_v2  ;;  %v129_v50 = vmul.f32 %v821_v12, %v96_v14 }
  0xb2   :  { %v474_v43 = vpack.c.bf16 %v458_v29, %v458_v29  ;;  %v440_v22 = vmin.f32 %v424_v60, 127.0  ;;  %v399_v9 = vmul.f32 %v284_v20, %v750_v27  ;;  %v657_v18 = vpop.eup %656  ;;  %vm262_vm8 = vweird.f32 %v655_v3 }
  0xb3   :  { %vm246_vm9 = vweird.f32 %v1004_v37  ;;  %v259_v27 = vmul.f32 %v655_v3, %v258_v1  ;;  %v242_v33 = vmul.f32 %v657_v18, %v1004_v37  ;;  %v253_v11 = vor.u32 1.1754944e-38, %v252_v8  ;;  %vm263_vm12 = vmor %vm261_vm5, %vm262_vm8 }
  0xb4   :  { %491 = vst.msk [vmem:[%s1200_s2 + $0xc] sm:$0xf] %vm487_vm7, %v474_v43  ;;  %v456_v24 = vmul.f32 %v440_v22, %v869_v63  ;;  %v574_v25 = vcvt.f32.s32 %v399_v9  ;;  %vm321_vm10 = vweird.f32 %v1014_v7  ;;  %v659_v35 = vpop.eup %658  ;;  %vm1043_vm11 = vcmp.eq.f32.partialorder %v250_v38, 8.507059e+37 }
  0xb5   :  { %v325_v63 = vand.u32 2147483647, %v1014_v7  ;;  %v327_v13 = vand.u32 2147483648, %v1014_v7  ;;  %v572_v26 = vand.u32 2147483647, %v399_v9  ;;  %v260_v45 = vadd.f32 %v655_v3, %v259_v27 }
  0xb6   :  { %v472_v41 = vpack.c.bf16 %v456_v24, %v456_v24  ;;  %v575_v15 = vcvt.s32.f32 %v574_v25  ;;  %v243_v5 = vsub.f32 1.0, %v242_v33  ;;  %v317_v48 = vmul.f32 %v659_v35, %v1014_v7 }
  0xb7   :  { %v577_v31 = vand.u32 2147483648, %v399_v9  ;;  %v1057_v32 = vmax.f32 %v129_v50, 1.1920929e-07  ;;  %v128_v47 = vmul.f32 %v821_v12, %v93_v34  ;;  %v264_v49 = vsel %vm263_vm12, %v655_v3, %v260_v45 }
  0xb8   :  { %489 = vst.msk [vmem:[%s1200_s2 + $0x4] sm:$0xf] %vm487_vm7, %v472_v41  ;;  %v576_v10 = vand.u32 2147483647, %v575_v15  ;;  %v244_v6 = vmul.f32 %v657_v18, %v243_v5  ;;  %vm247_vm13 = vweird.f32 %v657_v18  ;;  %v318_v53 = vsub.f32 1.0, %v317_v48 }
  0xb9   :  { %v269_v36 = vsel %vm1030_vm6, %v268_v17, %v264_v49  ;;  %vm1062_vm14 = vcmp.eq.f32.partialorder %v325_v63, 8.507059e+37  ;;  %660 = vrcp.f32 %v1057_v32  ;;  %vm573_vm15 = vcmp.lt.f32.partialorder %v572_v26, 8388608.0  ;;  %vm248_vm1 = vmor %vm246_vm9, %vm247_vm13 }
  0xba   :  { %v578_v55 = vor.u32 %v577_v31, %v576_v10  ;;  %v398_v59 = vmul.f32 %v269_v36, %v753_v28  ;;  %v245_v46 = vadd.f32 %v657_v18, %v244_v6  ;;  %v319_v61 = vmul.f32 %v659_v35, %v318_v53 }
  0xbb   :  { %vm322_vm0 = vweird.f32 %v659_v35  ;;  %v328_v0 = vor.u32 1.1754944e-38, %v327_v13  ;;  %v1068_v2 = vmax.f32 %v128_v47, 1.1920929e-07  ;;  %vm306_vm2 = vweird.f32 %v1057_v32 }
  0xbc   :  { %v579_v23 = vsel %vm573_vm15, %v578_v55, %v399_v9  ;;  %v566_v29 = vcvt.f32.s32 %v398_v59  ;;  %v133_v60 = vmul.f32 %v821_v12, %v108_v57  ;;  %v249_v4 = vsel %vm248_vm1, %v657_v18, %v245_v46  ;;  %vm323_vm3 = vmor %vm321_vm10, %vm322_vm0 }
  0xbd   :  { %v431_v3 = vmax.f32 %v579_v23, -128.0  ;;  %v320_v14 = vadd.f32 %v659_v35, %v319_v61  ;;  %v310_v28 = vand.u32 2147483647, %v1057_v32  ;;  %v312_v20 = vand.u32 2147483648, %v1057_v32  ;;  %v105_v61 = vpop.xlane.xlu1 %104 }
  0xbe   :  { %v564_v8 = vand.u32 2147483647, %v398_v59  ;;  %v567_v43 = vcvt.s32.f32 %v566_v29  ;;  %v254_v22 = vsel %vm1043_vm11, %v253_v11, %v249_v4  ;;  %v569_v38 = vand.u32 2147483648, %v398_v59 }
  0xbf   :  { %v447_v21 = vmin.f32 %v431_v3, 127.0  ;;  %v661_v9 = vpop.eup %660  ;;  %v397_v1 = vmul.f32 %v254_v22, %v757_v30  ;;  %v324_v16 = vsel %vm323_vm3, %v659_v35, %v320_v14  ;;  %662 = vrcp.f32 %v1068_v2 }
  0xc0   :  { %v568_v50 = vand.u32 2147483647, %v567_v43  ;;  %v329_v18 = vsel %vm1062_vm14, %v328_v0, %v324_v16  ;;  %v302_v24 = vmul.f32 %v661_v9, %v1057_v32  ;;  %v1089_v11 = vmax.f32 %v133_v60, 1.1920929e-07  ;;  %v102_v60 = vpop.xlane.xlu0 %101 }
  0xc1   :  { %v463_v17 = vmul.f32 %v447_v21, %v957_v58  ;;  %v556_v25 = vand.u32 2147483647, %v397_v1  ;;  %v558_v27 = vcvt.f32.s32 %v397_v1  ;;  %v402_v33 = vmul.f32 %v329_v18, %v774_v39 }
  0xc2   :  { %v570_v41 = vor.u32 %v569_v38, %v568_v50  ;;  %v303_v30 = vsub.f32 1.0, %v302_v24  ;;  %vm1091_vm4 = vcmp.eq.f32.partialorder %v310_v28, 8.507059e+37  ;;  %vm565_vm5 = vcmp.lt.f32.partialorder %v564_v8, 8388608.0 }
  0xc3   :  { %v479_v34 = vpack.c.bf16 %v463_v17, %v463_v17  ;;  %v559_v58 = vcvt.s32.f32 %v558_v27  ;;  %v598_v15 = vcvt.f32.s32 %v402_v33  ;;  %v313_v44 = vor.u32 1.1754944e-38, %v312_v20 }
  0xc4   :  { %v571_v63 = vsel %vm565_vm5, %v570_v41, %v398_v59  ;;  %v561_v39 = vand.u32 2147483648, %v397_v1  ;;  %v304_v13 = vmul.f32 %v661_v9, %v303_v30  ;;  %vm307_vm6 = vweird.f32 %v661_v9 }
  0xc5   :  { %496 = vst.msk [vmem:[%s1200_s2 + $0x20] sm:$0xf] %vm487_vm7, %v479_v34  ;;  %v663_v26 = vpop.eup %662  ;;  %v430_v45 = vmax.f32 %v571_v63, -128.0  ;;  %vm1099_vm8 = vcmp.lt.f32.partialorder %v556_v25, 8388608.0  ;;  %v560_v48 = vand.u32 2147483647, %v559_v58  ;;  %v599_v10 = vcvt.s32.f32 %v598_v15  ;;  %vm308_vm9 = vmor %vm306_vm2, %vm307_vm6 }
  0xc6   :  { %v596_v31 = vand.u32 2147483647, %v402_v33  ;;  %v601_v47 = vand.u32 2147483648, %v402_v33  ;;  %v305_v49 = vadd.f32 %v661_v9, %v304_v13  ;;  %v287_v6 = vmul.f32 %v663_v26, %v1068_v2 }
  0xc7   :  { %v446_v53 = vmin.f32 %v430_v45, 127.0  ;;  %v562_v55 = vor.u32 %v561_v39, %v560_v48  ;;  %v600_v36 = vand.u32 2147483647, %v599_v10  ;;  %v295_v56 = vand.u32 2147483647, %v1068_v2 }
  0xc8   :  { %v309_v57 = vsel %vm308_vm9, %v661_v9, %v305_v49  ;;  %v288_v59 = vsub.f32 1.0, %v287_v6  ;;  %v297_v46 = vand.u32 2147483648, %v1068_v2  ;;  %664 = vrcp.f32 %v1089_v11 }
  0xc9   :  { %v462_v23 = vmul.f32 %v446_v53, %v989_v19  ;;  %v563_v0 = vsel %vm1099_vm8, %v562_v55, %v397_v1  ;;  %v602_v3 = vor.u32 %v601_v47, %v600_v36  ;;  %v314_v29 = vsel %vm1091_vm4, %v313_v44, %v309_v57 }
  0xca   :  { %v429_v4 = vmax.f32 %v563_v0, -128.0  ;;  %vm597_vm10 = vcmp.lt.f32.partialorder %v596_v31, 8388608.0  ;;  %v401_v14 = vmul.f32 %v314_v29, %v777_v40  ;;  %v289_v28 = vmul.f32 %v663_v26, %v288_v59 }
  0xcb   :  { %v478_v20 = vpack.c.bf16 %v462_v23, %v462_v23  ;;  %v603_v21 = vsel %vm597_vm10, %v602_v3, %v402_v33  ;;  %vm292_vm11 = vweird.f32 %v663_v26  ;;  %v132_v8 = vmul.f32 %v821_v12, %v105_v61 }
  0xcc   :  { %v445_v43 = vmin.f32 %v429_v4, 127.0  ;;  %v434_v19 = vmax.f32 %v603_v21, -128.0  ;;  %v590_v22 = vcvt.f32.s32 %v401_v14  ;;  %v290_v9 = vadd.f32 %v663_v26, %v289_v28 }
  0xcd   :  { %495 = vst.msk [vmem:[%s1200_s2 + $0x1c] sm:$0xf] %vm487_vm7, %v478_v20  ;;  %vm291_vm12 = vweird.f32 %v1068_v2  ;;  %vm296_vm13 = vcmp.eq.f32.partialorder %v295_v56, 8.507059e+37  ;;  %v298_v38 = vor.u32 1.1754944e-38, %v297_v46  ;;  %v588_v17 = vand.u32 2147483647, %v401_v14 }
  0xce   :  { %v665_v40 = vpop.eup %664  ;;  %v461_v1 = vmul.f32 %v445_v43, %v1004_v37  ;;  %v450_v16 = vmin.f32 %v434_v19, 127.0  ;;  %v591_v50 = vcvt.s32.f32 %v590_v22  ;;  %vm293_vm14 = vmor %vm291_vm12, %vm292_vm11  ;;  %v593_v18 = vand.u32 2147483648, %v401_v14 }
  0xcf   :  { %v294_v24 = vsel %vm293_vm14, %v663_v26, %v290_v9  ;;  %v362_v25 = vmul.f32 %v665_v40, %v1089_v11  ;;  %v1124_v27 = vmax.f32 %v132_v8, 1.1920929e-07  ;;  %v370_v37 = vand.u32 2147483647, %v1089_v11 }
  0xd0   :  { %v477_v33 = vpack.c.bf16 %v461_v1, %v461_v1  ;;  %v466_v34 = vmul.f32 %v450_v16, %v1014_v7  ;;  %v592_v41 = vand.u32 2147483647, %v591_v50  ;;  %v299_v30 = vsel %vm296_vm13, %v298_v38, %v294_v24 }
  0xd1   :  { %v400_v35 = vmul.f32 %v299_v30, %v781_v42  ;;  %v363_v58 = vsub.f32 1.0, %v362_v25  ;;  %666 = vrcp.f32 %v1124_v27  ;;  %vm366_vm15 = vweird.f32 %v1089_v11  ;;  %v111_v42 = vpop.xlane.xlu0 %110 }
  0xd2   :  { %494 = vst.msk [vmem:[%s1200_s2 + $0x18] sm:$0xf] %vm487_vm7, %v477_v33  ;;  %v482_v15 = vpack.c.bf16 %v466_v34, %v466_v34  ;;  %v594_v44 = vor.u32 %v593_v18, %v592_v41  ;;  %v372_v7 = vand.u32 2147483648, %v1089_v11  ;;  %vm589_vm0 = vcmp.lt.f32.partialorder %v588_v17, 8388608.0 }
  0xd3   :  { %v582_v63 = vcvt.f32.s32 %v400_v35  ;;  %v364_v39 = vmul.f32 %v665_v40, %v363_v58  ;;  %vm367_vm1 = vweird.f32 %v665_v40  ;;  %v131_v26 = vmul.f32 %v821_v12, %v102_v60 }
  0xd4   :  { %499 = vst.msk [vmem:[%s1200_s2 + $0x2c] sm:$0xf] %vm487_vm7, %v482_v15  ;;  %v595_v13 = vsel %vm589_vm0, %v594_v44, %v401_v14  ;;  %vm371_vm2 = vcmp.eq.f32.partialorder %v370_v37, 8.507059e+37  ;;  %v580_v10 = vand.u32 2147483647, %v400_v35  ;;  %vm368_vm3 = vmor %vm366_vm15, %vm367_vm1  ;;  %v373_v31 = vor.u32 1.1754944e-38, %v372_v7 }
  0xd5   :  { %v433_v45 = vmax.f32 %v595_v13, -128.0  ;;  %v583_v5 = vcvt.s32.f32 %v582_v63  ;;  %v365_v48 = vadd.f32 %v665_v40, %v364_v39  ;;  %v1143_v47 = vmax.f32 %v131_v26, 1.1920929e-07 }
  0xd6   :  { %v134_v49 = vmul.f32 %v821_v12, %v111_v42  ;;  %v585_v36 = vand.u32 2147483648, %v400_v35  ;;  %vm581_vm4 = vcmp.lt.f32.partialorder %v580_v10, 8388608.0  ;;  %vm351_vm5 = vweird.f32 %v1124_v27 }
  0xd7   :  { %v667_v6 = vpop.eup %666  ;;  %v449_v53 = vmin.f32 %v433_v45, 127.0  ;;  %v584_v55 = vand.u32 2147483647, %v583_v5  ;;  %v369_v56 = vsel %vm368_vm3, %v665_v40, %v365_v48  ;;  %668 = vrcp.f32 %v1143_v47 }
  0xd8   :  { %v374_v57 = vsel %vm371_vm2, %v373_v31, %v369_v56  ;;  %v347_v59 = vmul.f32 %v667_v6, %v1124_v27  ;;  %v1151_v12 = vmax.f32 %v134_v49, 1.1920929e-07  ;;  %v357_v4 = vand.u32 2147483648, %v1124_v27 }
  0xd9   :  { %v465_v46 = vmul.f32 %v449_v53, %v1057_v32  ;;  %v586_v61 = vor.u32 %v585_v36, %v584_v55  ;;  %v405_v23 = vmul.f32 %v374_v57, %v798_v51  ;;  %vm352_vm6 = vweird.f32 %v667_v6 }
  0xda   :  { %v348_v0 = vsub.f32 1.0, %v347_v59  ;;  %v355_v20 = vand.u32 2147483647, %v1124_v27  ;;  %670 = vrcp.f32 %v1151_v12  ;;  %vm353_vm8 = vmor %vm351_vm5, %vm352_vm6  ;;  %v358_v9 = vor.u32 1.1754944e-38, %v357_v4 }
  0xdb   :  { %v481_v3 = vpack.c.bf16 %v465_v46, %v465_v46  ;;  %v587_v29 = vsel %vm581_vm4, %v586_v61, %v400_v35  ;;  %v622_v60 = vcvt.f32.s32 %v405_v23  ;;  %v620_v8 = vand.u32 2147483647, %v405_v23 }
  0xdc   :  { %v432_v14 = vmax.f32 %v587_v29, -128.0  ;;  %v349_v28 = vmul.f32 %v667_v6, %v348_v0  ;;  %v625_v22 = vand.u32 2147483648, %v405_v23  ;;  %vm356_vm9 = vcmp.eq.f32.partialorder %v355_v20, 8.507059e+37 }
  0xdd   :  { %498 = vst.msk [vmem:[%s1200_s2 + $0x28] sm:$0xf] %vm487_vm7, %v481_v3  ;;  %v623_v51 = vcvt.s32.f32 %v622_v60  ;;  %v669_v32 = vpop.eup %668  ;;  %v340_v18 = vand.u32 2147483647, %v1143_v47  ;;  %vm621_vm10 = vcmp.lt.f32.partialorder %v620_v8, 8388608.0  ;;  %v342_v33 = vand.u32 2147483648, %v1143_v47 }
  0xde   :  { %v448_v21 = vmin.f32 %v432_v14, 127.0  ;;  %v350_v43 = vadd.f32 %v667_v6, %v349_v28  ;;  %v332_v38 = vmul.f32 %v669_v32, %v1143_v47  ;;  %vm337_vm11 = vweird.f32 %v669_v32 }
  0xdf   :  { %v624_v19 = vand.u32 2147483647, %v623_v51  ;;  %vm336_vm12 = vweird.f32 %v1143_v47  ;;  %vm341_vm14 = vcmp.eq.f32.partialorder %v340_v18, 8.507059e+37  ;;  %v343_v44 = vor.u32 1.1754944e-38, %v342_v33 }
  0xe0   :  { %v464_v40 = vmul.f32 %v448_v21, %v1068_v2  ;;  %v354_v1 = vsel %vm353_vm8, %v667_v6, %v350_v43  ;;  %v333_v50 = vsub.f32 1.0, %v332_v38  ;;  %v671_v34 = vpop.eup %670  ;;  %vm338_vm13 = vmor %vm336_vm12, %vm337_vm11  ;;  %v387_v42 = vand.u32 2147483648, %v1151_v12 }
  0xe1   :  { %v626_v16 = vor.u32 %v625_v22, %v624_v19  ;;  %v359_v17 = vsel %vm356_vm9, %v358_v9, %v354_v1  ;;  %v377_v37 = vmul.f32 %v671_v34, %v1151_v12  ;;  %vm382_vm15 = vweird.f32 %v671_v34 }
  0xe2   :  { %v480_v24 = vpack.c.bf16 %v464_v40, %v464_v40  ;;  %v404_v25 = vmul.f32 %v359_v17, %v801_v52  ;;  %v334_v30 = vmul.f32 %v669_v32, %v333_v50  ;;  %v385_v31 = vand.u32 2147483647, %v1151_v12 }
  0xe3   :  { %v627_v41 = vsel %vm621_vm10, %v626_v16, %v405_v23  ;;  %v378_v39 = vsub.f32 1.0, %v377_v37  ;;  %vm381_vm1 = vweird.f32 %v1151_v12  ;;  %v388_v36 = vor.u32 1.1754944e-38, %v387_v42 }
  0xe4   :  { %497 = vst.msk [vmem:[%s1200_s2 + $0x24] sm:$0xf] %vm487_vm7, %v480_v24  ;;  %v437_v2 = vmax.f32 %v627_v41, -128.0  ;;  %v614_v35 = vcvt.f32.s32 %v404_v25  ;;  %v335_v58 = vadd.f32 %v669_v32, %v334_v30  ;;  %v612_v7 = vand.u32 2147483647, %v404_v25  ;;  %vm383_vm2 = vmor %vm381_vm1, %vm382_vm15 }
  0xe5   :  { %v617_v45 = vand.u32 2147483648, %v404_v25  ;;  %v379_v10 = vmul.f32 %v671_v34, %v378_v39  ;;  %vm386_vm3 = vcmp.eq.f32.partialorder %v385_v31, 8.507059e+37 }
  0xe6   :  { %v453_v15 = vmin.f32 %v437_v2, 127.0  ;;  %v615_v52 = vcvt.s32.f32 %v614_v35  ;;  %v339_v63 = vsel %vm338_vm13, %v669_v32, %v335_v58  ;;  %vm613_vm0 = vcmp.lt.f32.partialorder %v612_v7, 8388608.0 }
  0xe7   :  { %v344_v5 = vsel %vm341_vm14, %v343_v44, %v339_v63  ;;  %v380_v55 = vadd.f32 %v671_v34, %v379_v10 }
  0xe8   :  { %v469_v13 = vmul.f32 %v453_v15, %v1089_v11  ;;  %v616_v26 = vand.u32 2147483647, %v615_v52  ;;  %v403_v48 = vmul.f32 %v344_v5, %v805_v54 }
  0xe9   :  { %v384_v57 = vsel %vm383_vm2, %v671_v34, %v380_v55 }
  0xea   :  { %v485_v49 = vpack.c.bf16 %v469_v13, %v469_v13  ;;  %v618_v6 = vor.u32 %v617_v45, %v616_v26  ;;  %v606_v53 = vcvt.f32.s32 %v403_v48  ;;  %v604_v59 = vand.u32 2147483647, %v403_v48 }
  0xeb   :  { %v389_v46 = vsel %vm386_vm3, %v388_v36, %v384_v57  ;;  %v609_v0 = vand.u32 2147483648, %v403_v48 }
  0xec   :  { %502 = vst.msk [vmem:[%s1200_s2 + $0x38] sm:$0xf] %vm487_vm7, %v485_v49  ;;  %v619_v11 = vsel %vm613_vm0, %v618_v6, %v404_v25  ;;  %v607_v56 = vcvt.s32.f32 %v606_v53  ;;  %v406_v3 = vmul.f32 %v389_v46, %v817_v62  ;;  %vm605_vm4 = vcmp.lt.f32.partialorder %v604_v59, 8388608.0 }
  0xed   :  { %v436_v54 = vmax.f32 %v619_v11, -128.0 }
  0xee   :  { %v608_v23 = vand.u32 2147483647, %v607_v56  ;;  %v630_v4 = vcvt.f32.s32 %v406_v3  ;;  %v628_v32 = vand.u32 2147483647, %v406_v3  ;;  %v633_v8 = vand.u32 2147483648, %v406_v3 }
  0xef   :  { %v452_v61 = vmin.f32 %v436_v54, 127.0 }
  0xf0   :  { %v610_v60 = vor.u32 %v609_v0, %v608_v23  ;;  %v631_v20 = vcvt.s32.f32 %v630_v4  ;;  %vm629_vm5 = vcmp.lt.f32.partialorder %v628_v32, 8388608.0 }
  0xf1   :  { %v468_v29 = vmul.f32 %v452_v61, %v1124_v27 }
  0xf2   :  { %v611_v28 = vsel %vm605_vm4, %v610_v60, %v403_v48  ;;  %v632_v21 = vand.u32 2147483647, %v631_v20 }
  0xf3   :  { %v484_v14 = vpack.c.bf16 %v468_v29, %v468_v29  ;;  %v435_v51 = vmax.f32 %v611_v28, -128.0 }
  0xf4   :  { %v634_v19 = vor.u32 %v633_v8, %v632_v21 }
  0xf5   :  { %501 = vst.msk [vmem:[%s1200_s2 + $0x34] sm:$0xf] %vm487_vm7, %v484_v14  ;;  %v451_v43 = vmin.f32 %v435_v51, 127.0 }
  0xf6   :  { %v635_v27 = vsel %vm629_vm5, %v634_v19, %v406_v3 }
  0xf7   :  { %v467_v62 = vmul.f32 %v451_v43, %v1143_v47  ;;  %v438_v9 = vmax.f32 %v635_v27, -128.0 }
  0xf9   :  { %v483_v22 = vpack.c.bf16 %v467_v62, %v467_v62  ;;  %v454_v38 = vmin.f32 %v438_v9, 127.0 }
  0xfb   :  { %500 = vst.msk [vmem:[%s1200_s2 + $0x30] sm:$0xf] %vm487_vm7, %v483_v22  ;;  %v470_v40 = vmul.f32 %v454_v38, %v1151_v12 }
  0xfd   :  { %v486_v1 = vpack.c.bf16 %v470_v40, %v470_v40 }
  0xff   :  { %503 = vst.msk [vmem:[%s1200_s2 + $0x3c] sm:$0xf] %vm487_vm7, %v486_v1 }

</bundles_post_ra>
